<compile_context>
chip_gen: v5e
topology: v5e:2x2
jax: 0.10.0
libtpu: 0.0.40
codegen_flags: <defaults>
</compile_context>

<pallas_src>
import functools
import math

import jax
import jax.numpy as jnp
from jax.experimental import pallas as pl
from jax.experimental.pallas import tpu as pltpu


def _round_up(x, m):
    return ((x + m - 1) // m) * m


def _cdiv(a, b):
    return (a + b - 1) // b


def _vmem_capacity_bytes():
    """Per-core VMEM capacity (128 MiB on v5e/v6e, 64 MiB on v7x)."""
    try:
        cap = getattr(pltpu.get_tpu_info(), "vmem_capacity_bytes", None)
        if cap:
            return int(cap)
    except Exception:
        pass
    return 128 * 2 ** 20


@functools.lru_cache(maxsize=1)
def _single_buffered_weights_supported():
    """One-time cached capability probe for pipeline_mode=pl.Buffered(1)."""
    if not hasattr(pl, "Buffered"):
        return False

    def _probe_kernel(a_ref, o_ref):
        o_ref[...] = a_ref[...] * 2.0

    try:
        f = pl.pallas_call(
            _probe_kernel,
            out_shape=jax.ShapeDtypeStruct((8, 128), jnp.float32),
            grid_spec=pltpu.PrefetchScalarGridSpec(
                num_scalar_prefetch=0,
                grid=(2,),
                in_specs=[pl.BlockSpec((8, 128), lambda i: (0, 0),
                                       pipeline_mode=pl.Buffered(1))],
                out_specs=pl.BlockSpec((8, 128), lambda i: (0, 0))),
        )
        jax.jit(f).lower(jax.ShapeDtypeStruct((8, 128), jnp.float32)).compile()
        return True
    except Exception:  # capability probe only; real kernels never take this path
        return False


# --------------------------------------------------------------------------
# Kernels
# --------------------------------------------------------------------------

def _mrc_resident_kernel(x_ref, w1_ref, b1_ref, gamma_ref, beta_ref,
                         w2_ref, b2_ref, o_ref, *, eps):
    """One row tile with fully VMEM-resident weights."""
    x = x_ref[...]
    if x.dtype != w1_ref.dtype:           # no-op when x was prepared host-side
        x = x.astype(w1_ref.dtype)
    h = jnp.dot(x, w1_ref[...], preferred_element_type=jnp.float32)
    h = jnp.maximum(h + b1_ref[...].astype(jnp.float32), 0.0)

    # One-pass LayerNorm statistics in fp32 (post-ReLU magnitudes are benign).
    mean = jnp.mean(h, axis=-1, keepdims=True)
    msq = jnp.mean(h * h, axis=-1, keepdims=True)
    var = jnp.maximum(msq - mean * mean, 0.0)
    h = (h - mean) * jax.lax.rsqrt(var + eps)
    h = h * gamma_ref[...].astype(jnp.float32) + beta_ref[...].astype(jnp.float32)

    if h.dtype != w2_ref.dtype:
        h = h.astype(w2_ref.dtype)
    out = jnp.dot(h, w2_ref[...], preferred_element_type=jnp.float32)
    o_ref[...] = (out + b2_ref[...].astype(jnp.float32)).astype(o_ref.dtype)


def _mrc_ktiled_kernel(x_ref, w1_ref, b1_ref, gamma_ref, beta_ref,
                       w2_ref, b2_ref, o_ref, h_acc_ref, *, eps):
    """Row tile with w1 streamed along K; ReLU/LN/Linear2 on the last K step."""
    k = pl.program_id(1)

    @pl.when(k == 0)
    def _init():
        h_acc_ref[...] = jnp.zeros_like(h_acc_ref)

    x = x_ref[...]
    if x.dtype != w1_ref.dtype:
        x = x.astype(w1_ref.dtype)
    h_acc_ref[...] += jnp.dot(x, w1_ref[...], preferred_element_type=jnp.float32)

    @pl.when(k == pl.num_programs(1) - 1)
    def _finalize():
        h = jnp.maximum(h_acc_ref[...] + b1_ref[...].astype(jnp.float32), 0.0)
        mean = jnp.mean(h, axis=-1, keepdims=True)
        msq = jnp.mean(h * h, axis=-1, keepdims=True)
        var = jnp.maximum(msq - mean * mean, 0.0)
        h = (h - mean) * jax.lax.rsqrt(var + eps)
        h = (h * gamma_ref[...].astype(jnp.float32)
             + beta_ref[...].astype(jnp.float32))
        if h.dtype != w2_ref.dtype:
            h = h.astype(w2_ref.dtype)
        out = jnp.dot(h, w2_ref[...], preferred_element_type=jnp.float32)
        o_ref[...] = (out + b2_ref[...].astype(jnp.float32)).astype(o_ref.dtype)


# --------------------------------------------------------------------------
# Parameter preparation (done once, not per call)
# --------------------------------------------------------------------------

def prepare_params(params, *, mxu_dtype=jnp.bfloat16):
    """Cast weights to the MXU dtype and pad the label dim once (lane-dense)."""
    w1 = jnp.asarray(params["w1"])
    b1 = jnp.asarray(params["b1"])
    gamma = jnp.asarray(params["gamma"])
    beta = jnp.asarray(params["beta"])
    w2 = jnp.asarray(params["w2"])
    b2 = jnp.asarray(params["b2"])

    hidden = w1.shape[0]
    assert w1.shape == (hidden, hidden) and w2.shape[0] == hidden
    label_dim = w2.shape[1]
    label_pad = _round_up(label_dim, 128)

    wdt = w1.dtype if mxu_dtype is None else mxu_dtype
    w1 = w1.astype(wdt)
    w2 = w2.astype(wdt)
    b2f = b2.astype(jnp.float32)
    if label_pad != label_dim:
        w2 = jnp.pad(w2, ((0, 0), (0, label_pad - label_dim)))
        b2f = jnp.pad(b2f, (0, label_pad - label_dim))

    return {
        "_prepared": True,
        "hidden": hidden,
        "label_dim": label_dim,
        "label_pad": label_pad,
        "w1": w1,
        "w2": w2,
        "b1": b1.astype(jnp.float32).reshape(1, hidden),
        "gamma": gamma.astype(jnp.float32).reshape(1, hidden),
        "beta": beta.astype(jnp.float32).reshape(1, hidden),
        "b2": b2f.reshape(1, label_pad),
    }


def _select_row_tile(requested, n_rows, fits):
    if n_rows <= 8:
        return max(1, n_rows)           # block == full row extent
    if requested is not None:
        rt = max(8, _round_up(requested, 8))
    else:
        rt = 32
        for cand in (512, 256, 128, 64, 32):
            if fits(cand):
                rt = cand
                break
    rt = min(rt, _round_up(n_rows, 8))
    # Keep >= 2 grid steps so both v7x TensorCores get work on small inputs.
    while rt > 8 and _cdiv(n_rows, rt) < 2:
        rt = max(8, _round_up(rt // 2, 8))
    return rt


# --------------------------------------------------------------------------
# Public wrapper
# --------------------------------------------------------------------------

def region_classification(x, params, *, eps=1e-12, row_tile=None, k_tile=None,
                          mxu_dtype=jnp.bfloat16, single_buffer_weights=True,
                          cast_input_on_host=True, force_path=None):
    """x: (..., hidden). Returns (..., label_dim).

    `params` may be raw (init_params output) or pre-prepared via prepare_params
    (preferred: avoids re-casting/padding weights every call).
    """
    if not (isinstance(params, dict) and params.get("_prepared", False)):
        params = prepare_params(params, mxu_dtype=mxu_dtype)

    hidden = params["hidden"]
    label_dim = params["label_dim"]
    label_pad = params["label_pad"]
    w1, w2 = params["w1"], params["w2"]
    b1, gamma, beta, b2 = params["b1"], params["gamma"], params["beta"], params["b2"]

    assert x.shape[-1] == hidden
    lead_shape = x.shape[:-1]
    n_rows = math.prod(lead_shape) if lead_shape else 1
    out_dtype = x.dtype

    x2d = x.reshape(n_rows, hidden)
    if cast_input_on_host and x2d.dtype != w1.dtype:
        # Halves x HBM->VMEM traffic in the kernel and drops a per-tile VPU
        # cast; callers already holding MXU-dtype activations pay nothing.
        x2d = x2d.astype(w1.dtype)

    xb = jnp.dtype(x2d.dtype).itemsize
    wb = jnp.dtype(w1.dtype).itemsize
    ob = jnp.dtype(out_dtype).itemsize

    weight_bufs = 1 if (single_buffer_weights
                        and _single_buffered_weights_supported()) else 2

    # ---- per-generation VMEM budget (96 MiB on v5e/v6e, ~50 MiB on v7x).
    vmem_cap = _vmem_capacity_bytes()
    hw_limit = int(min(96 * 2 ** 20, 0.78 * vmem_cap))
    budget = 0.85 * hw_limit
    small_bytes = (3 * hidden + label_pad) * 4

    def resident_bytes(rt):
        return (weight_bufs * (hidden * hidden + hidden * label_pad) * wb
                + small_bytes
                + 2 * rt * hidden * xb        # double-buffered x tile
                + 2 * rt * label_pad * ob     # double-buffered out tile
                + 2 * rt * hidden * 4         # fp32 h (+ one temporary)
                + rt * label_pad * 4)

    def ktiled_bytes(rt, tk):
        return (weight_bufs * hidden * label_pad * wb    # resident w2
                + small_bytes
                + 2 * tk * hidden * wb        # streamed, double-buffered w1 block
                + 2 * rt * tk * xb
                + 2 * rt * label_pad * ob
                + 2 * rt * hidden * 4         # fp32 accumulator + LN temporary
                + rt * label_pad * 4)

    # ---- path selection: stream w1 when resident weights overflow the budget.
    k_candidates = [c for c in (1024, 512, 256, 128)
                    if hidden % c == 0 and c < hidden]
    can_ktile = bool(k_candidates)
    if force_path == "resident":
        use_ktiled = False
    elif force_path == "ktiled":
        use_ktiled = can_ktile
    else:
        use_ktiled = can_ktile and resident_bytes(128) > budget

    if use_ktiled:
        if k_tile is not None:
            tk = k_tile
            assert hidden % tk == 0 and tk % 128 == 0
        else:
            tk = k_candidates[-1]
            for cand in k_candidates:
                if ktiled_bytes(256, cand) <= budget:
                    tk = cand
                    break
        fits = lambda rt: ktiled_bytes(rt, tk) <= budget
    else:
        tk = None
        fits = lambda rt: resident_bytes(rt) <= budget

    row_tile = _select_row_tile(row_tile, n_rows, fits)
    grid_rows = _cdiv(n_rows, row_tile)

    est = ktiled_bytes(row_tile, tk) if use_ktiled else resident_bytes(row_tile)
    vmem_limit = int(max(32 * 2 ** 20, min(hw_limit, int(est * 1.4))))

    const_mode = pl.Buffered(1) if weight_bufs == 1 else None
    n_grid = 2 if use_ktiled else 1

    def const_spec(shape):
        if n_grid == 1:
            imap = lambda i: (0,) * len(shape)
        else:
            imap = lambda i, k: (0,) * len(shape)
        if const_mode is None:
            return pl.BlockSpec(shape, imap)
        return pl.BlockSpec(shape, imap, pipeline_mode=const_mode)

    if not use_ktiled:
        grid = (grid_rows,)
        in_specs = [
            pl.BlockSpec((row_tile, hidden), lambda i: (i, 0)),   # x tile
            const_spec((hidden, hidden)),                         # w1
            const_spec((1, hidden)),                              # b1
            const_spec((1, hidden)),                              # gamma
            const_spec((1, hidden)),                              # beta
            const_spec((hidden, label_pad)),                      # w2
            const_spec((1, label_pad)),                           # b2
        ]
        out_specs = pl.BlockSpec((row_tile, label_pad), lambda i: (i, 0))
        scratch = ()
        kernel = functools.partial(_mrc_resident_kernel, eps=eps)
        dims = ("parallel",)
    else:
        grid = (grid_rows, hidden // tk)
        in_specs = [
            pl.BlockSpec((row_tile, tk), lambda i, k: (i, k)),    # x tile
            pl.BlockSpec((tk, hidden), lambda i, k: (k, 0)),      # streamed w1
            const_spec((1, hidden)),                              # b1
            const_spec((1, hidden)),                              # gamma
            const_spec((1, hidden)),                              # beta
            const_spec((hidden, label_pad)),                      # w2
            const_spec((1, label_pad)),                           # b2
        ]
        out_specs = pl.BlockSpec((row_tile, label_pad), lambda i, k: (i, 0))
        scratch = (pltpu.VMEM((row_tile, hidden), jnp.float32),)
        kernel = functools.partial(_mrc_ktiled_kernel, eps=eps)
        dims = ("parallel", "arbitrary")

    cost = pl.CostEstimate(
        flops=2 * n_rows * hidden * (hidden + label_pad),
        transcendentals=n_rows,
        bytes_accessed=(n_rows * hidden * xb
                        + n_rows * label_pad * ob
                        + hidden * (hidden + label_pad) * wb))

    out2d = pl.pallas_call(
        kernel,
        out_shape=jax.ShapeDtypeStruct((n_rows, label_pad), out_dtype),
        grid_spec=pltpu.PrefetchScalarGridSpec(
            num_scalar_prefetch=0,
            grid=grid,
            in_specs=in_specs,
            out_specs=out_specs,
            scratch_shapes=scratch),
        compiler_params=pltpu.CompilerParams(
            dimension_semantics=dims,
            vmem_limit_bytes=vmem_limit),
        cost_estimate=cost,
    )(x2d, w1, b1, gamma, beta, w2, b2)

    if label_pad != label_dim:
        out2d = out2d[:, :label_dim]
    return out2d.reshape(*lead_shape, label_dim)


# --------------------------------------------------------------------------
# Parameter init / reference
# --------------------------------------------------------------------------

def init_params(key, hidden_size, label_dim, dtype=jnp.float32):
    k1, k2, k3, k4 = jax.random.split(key, 4)
    scale1 = 1.0 / jnp.sqrt(hidden_size)
    return {
        "w1": jax.random.normal(k1, (hidden_size, hidden_size), dtype) * scale1,
        "b1": jax.random.normal(k2, (hidden_size,), dtype) * 0.02,
        "gamma": jnp.ones((hidden_size,), dtype),
        "beta": jnp.zeros((hidden_size,), dtype),
        "w2": jax.random.normal(k3, (hidden_size, label_dim), dtype) * scale1,
        "b2": jax.random.normal(k4, (label_dim,), dtype) * 0.02,
    }


def _reference(x, params, eps=1e-12):
    h = x @ params["w1"] + params["b1"]
    h = jnp.maximum(h, 0.0)
    mean = h.mean(-1, keepdims=True)
    var = ((h - mean) ** 2).mean(-1, keepdims=True)
    h = (h - mean) / jnp.sqrt(var + eps)
    h = h * params["gamma"] + params["beta"]
    return h @ params["w2"] + params["b2"]


if __name__ == "__main__":
    key = jax.random.PRNGKey(0)
    k_x, k_p, k_x2, k_p2 = jax.random.split(key, 4)

    # --- Small config (resident-weights path), shapes implied by the module.
    batch, seq, hidden, label_dim = 2, 8, 32, 16
    x = jax.random.normal(k_x, (batch, seq, hidden), jnp.float32)
    params = init_params(k_p, hidden, label_dim)
    ref = _reference(x, params)

    # Exact fp32 matmul path (matches PyTorch module numerics); params prepared once.
    p_fp32 = prepare_params(params, mxu_dtype=None)
    out_fp32 = region_classification(x, p_fp32)
    jax.block_until_ready(out_fp32)
    assert out_fp32.shape == (batch, seq, label_dim)
    assert jnp.allclose(out_fp32, ref, atol=1e-4, rtol=1e-4)

    # Default performance path: bf16 MXU operands, fp32 accumulation.
    p_bf16 = prepare_params(params, mxu_dtype=jnp.bfloat16)
    out_bf16 = region_classification(x, p_bf16)
    jax.block_until_ready(out_bf16)
    assert out_bf16.shape == (batch, seq, label_dim)
    assert jnp.allclose(out_bf16, ref, atol=5e-2, rtol=5e-2)

    # --- Exercise the K-tiled (streamed-w1) path and partial boundary row blocks.
    b2_, s2_, h2_, l2_ = 2, 23, 256, 200
    x2 = jax.random.normal(k_x2, (b2_, s2_, h2_), jnp.float32)
    params2 = init_params(k_p2, h2_, l2_)
    ref2 = _reference(x2, params2)
    p2_fp32 = prepare_params(params2, mxu_dtype=None)
    out2 = region_classification(x2, p2_fp32, force_path="ktiled")
    jax.block_until_ready(out2)
    assert out2.shape == (b2_, s2_, l2_)
    assert jnp.allclose(out2, ref2, atol=5e-3, rtol=5e-3)

    print("KERNEL_OK")
</pallas_src>

<mosaic_0001>
module attributes {stable_mosaic.version = 11 : i64} {
  func.func @_mrc_resident_kernel(%arg0: i32, %arg1: memref<8x32xf32, #tpu.memory_space<vmem>>, %arg2: memref<32x32xf32, #tpu.memory_space<vmem>>, %arg3: memref<1x32xf32, #tpu.memory_space<vmem>>, %arg4: memref<1x32xf32, #tpu.memory_space<vmem>>, %arg5: memref<1x32xf32, #tpu.memory_space<vmem>>, %arg6: memref<32x128xf32, #tpu.memory_space<vmem>>, %arg7: memref<1x128xf32, #tpu.memory_space<vmem>>, %arg8: memref<8x128xf32, #tpu.memory_space<vmem>>) attributes {dimension_semantics = [#tpu.dimension_semantics<parallel>], iteration_bounds = array<i64: 2>, scalar_prefetch = 0 : i64, scratch_operands = 0 : i64, tpu.core_type = #tpu.core_type<tc>, window_params = [{transform_indices = @transform_0, window_bounds = array<i64: 8, 32>}, {pipeline_mode = #tpu.pipeline_mode<synchronous>, transform_indices = @transform_1, window_bounds = array<i64: 32, 32>}, {pipeline_mode = #tpu.pipeline_mode<synchronous>, transform_indices = @transform_2, window_bounds = array<i64: 1, 32>}, {pipeline_mode = #tpu.pipeline_mode<synchronous>, transform_indices = @transform_3, window_bounds = array<i64: 1, 32>}, {pipeline_mode = #tpu.pipeline_mode<synchronous>, transform_indices = @transform_4, window_bounds = array<i64: 1, 32>}, {pipeline_mode = #tpu.pipeline_mode<synchronous>, transform_indices = @transform_5, window_bounds = array<i64: 32, 128>}, {pipeline_mode = #tpu.pipeline_mode<synchronous>, transform_indices = @transform_6, window_bounds = array<i64: 1, 128>}, {transform_indices = @transform_7, window_bounds = array<i64: 8, 128>}]} {
    %c0 = arith.constant 0 : index
    %c0_0 = arith.constant 0 : index
    %0 = vector.load %arg1[%c0, %c0_0] : memref<8x32xf32, #tpu.memory_space<vmem>>, vector<8x32xf32>
    %c0_1 = arith.constant 0 : index
    %c0_2 = arith.constant 0 : index
    %1 = vector.load %arg2[%c0_1, %c0_2] : memref<32x32xf32, #tpu.memory_space<vmem>>, vector<32x32xf32>
    %cst = arith.constant dense<0.000000e+00> : vector<8x32xf32>
    %2 = tpu.matmul %0, %1, %cst {dimension_numbers = #tpu.dot_dimension_numbers<[1], [0], [0], [1], [0, 0, 1, 1], [], []>} : vector<8x32xf32>, vector<32x32xf32>, vector<8x32xf32> -> vector<8x32xf32>
    %c0_3 = arith.constant 0 : index
    %c0_4 = arith.constant 0 : index
    %3 = vector.load %arg3[%c0_3, %c0_4] : memref<1x32xf32, #tpu.memory_space<vmem>>, vector<1x32xf32>
    %4 = vector.broadcast %3 : vector<1x32xf32> to vector<8x32xf32>
    %5 = arith.addf %2, %4 : vector<8x32xf32>
    %cst_5 = arith.constant 0.000000e+00 : f32
    %6 = vector.broadcast %cst_5 : f32 to vector<8x32xf32>
    %7 = arith.maximumf %5, %6 : vector<8x32xf32>
    %cst_6 = arith.constant dense<0.000000e+00> : vector<8xf32>
    %8 = vector.multi_reduction <add>, %7, %cst_6 [1] : vector<8x32xf32> to vector<8xf32>
    %9 = vector.shape_cast %8 : vector<8xf32> to vector<8x1xf32>
    %cst_7 = arith.constant 3.200000e+01 : f32
    %10 = vector.broadcast %cst_7 : f32 to vector<8x1xf32>
    %11 = arith.divf %9, %10 : vector<8x1xf32>
    %12 = arith.mulf %7, %7 : vector<8x32xf32>
    %cst_8 = arith.constant dense<0.000000e+00> : vector<8xf32>
    %13 = vector.multi_reduction <add>, %12, %cst_8 [1] : vector<8x32xf32> to vector<8xf32>
    %14 = vector.shape_cast %13 : vector<8xf32> to vector<8x1xf32>
    %cst_9 = arith.constant 3.200000e+01 : f32
    %15 = vector.broadcast %cst_9 : f32 to vector<8x1xf32>
    %16 = arith.divf %14, %15 : vector<8x1xf32>
    %17 = arith.mulf %11, %11 : vector<8x1xf32>
    %18 = arith.subf %16, %17 : vector<8x1xf32>
    %cst_10 = arith.constant 0.000000e+00 : f32
    %19 = vector.broadcast %cst_10 : f32 to vector<8x1xf32>
    %20 = arith.maximumf %18, %19 : vector<8x1xf32>
    %21 = vector.broadcast %11 : vector<8x1xf32> to vector<8x32xf32>
    %22 = arith.subf %7, %21 : vector<8x32xf32>
    %cst_11 = arith.constant 9.99999996E-13 : f32
    %23 = vector.broadcast %cst_11 : f32 to vector<8x1xf32>
    %24 = arith.addf %20, %23 : vector<8x1xf32>
    %25 = math.rsqrt %24 : vector<8x1xf32>
    %26 = vector.broadcast %25 : vector<8x1xf32> to vector<8x32xf32>
    %27 = arith.mulf %22, %26 : vector<8x32xf32>
    %c0_12 = arith.constant 0 : index
    %c0_13 = arith.constant 0 : index
    %28 = vector.load %arg4[%c0_12, %c0_13] : memref<1x32xf32, #tpu.memory_space<vmem>>, vector<1x32xf32>
    %29 = vector.broadcast %28 : vector<1x32xf32> to vector<8x32xf32>
    %30 = arith.mulf %27, %29 : vector<8x32xf32>
    %c0_14 = arith.constant 0 : index
    %c0_15 = arith.constant 0 : index
    %31 = vector.load %arg5[%c0_14, %c0_15] : memref<1x32xf32, #tpu.memory_space<vmem>>, vector<1x32xf32>
    %32 = vector.broadcast %31 : vector<1x32xf32> to vector<8x32xf32>
    %33 = arith.addf %30, %32 : vector<8x32xf32>
    %c0_16 = arith.constant 0 : index
    %c0_17 = arith.constant 0 : index
    %34 = vector.load %arg6[%c0_16, %c0_17] : memref<32x128xf32, #tpu.memory_space<vmem>>, vector<32x128xf32>
    %cst_18 = arith.constant dense<0.000000e+00> : vector<8x128xf32>
    %35 = tpu.matmul %33, %34, %cst_18 {dimension_numbers = #tpu.dot_dimension_numbers<[1], [0], [0], [1], [0, 0, 1, 1], [], []>} : vector<8x32xf32>, vector<32x128xf32>, vector<8x128xf32> -> vector<8x128xf32>
    %c0_19 = arith.constant 0 : index
    %c0_20 = arith.constant 0 : index
    %36 = vector.load %arg7[%c0_19, %c0_20] : memref<1x128xf32, #tpu.memory_space<vmem>>, vector<1x128xf32>
    %37 = vector.broadcast %36 : vector<1x128xf32> to vector<8x128xf32>
    %38 = arith.addf %35, %37 : vector<8x128xf32>
    %c0_21 = arith.constant 0 : index
    %c0_22 = arith.constant 0 : index
    %39 = vector.load %arg8[%c0_21, %c0_22] : memref<8x128xf32, #tpu.memory_space<vmem>>, vector<8x128xf32>
    tpu.vector_store %arg8[%c0_21, %c0_22], %38 {strides = array<i32>} : memref<8x128xf32, #tpu.memory_space<vmem>>, vector<8x128xf32>,
    return
  }
  func.func @transform_0(%arg0: i32) -> (i32, i32) {
    %c0_i32 = arith.constant 0 : i32
    %c0_i32_0 = arith.constant 0 : i32
    return %arg0, %c0_i32 : i32, i32
  }
  func.func @transform_1(%arg0: i32) -> (i32, i32) {
    %c0_i32 = arith.constant 0 : i32
    %c0_i32_0 = arith.constant 0 : i32
    %c0_i32_1 = arith.constant 0 : i32
    return %c0_i32, %c0_i32_0 : i32, i32
  }
  func.func @transform_2(%arg0: i32) -> (i32, i32) {
    %c0_i32 = arith.constant 0 : i32
    %c0_i32_0 = arith.constant 0 : i32
    %c0_i32_1 = arith.constant 0 : i32
    return %c0_i32, %c0_i32_0 : i32, i32
  }
  func.func @transform_3(%arg0: i32) -> (i32, i32) {
    %c0_i32 = arith.constant 0 : i32
    %c0_i32_0 = arith.constant 0 : i32
    %c0_i32_1 = arith.constant 0 : i32
    return %c0_i32, %c0_i32_0 : i32, i32
  }
  func.func @transform_4(%arg0: i32) -> (i32, i32) {
    %c0_i32 = arith.constant 0 : i32
    %c0_i32_0 = arith.constant 0 : i32
    %c0_i32_1 = arith.constant 0 : i32
    return %c0_i32, %c0_i32_0 : i32, i32
  }
  func.func @transform_5(%arg0: i32) -> (i32, i32) {
    %c0_i32 = arith.constant 0 : i32
    %c0_i32_0 = arith.constant 0 : i32
    %c0_i32_1 = arith.constant 0 : i32
    return %c0_i32, %c0_i32_0 : i32, i32
  }
  func.func @transform_6(%arg0: i32) -> (i32, i32) {
    %c0_i32 = arith.constant 0 : i32
    %c0_i32_0 = arith.constant 0 : i32
    %c0_i32_1 = arith.constant 0 : i32
    return %c0_i32, %c0_i32_0 : i32, i32
  }
  func.func @transform_7(%arg0: i32) -> (i32, i32) {
    %c0_i32 = arith.constant 0 : i32
    %c0_i32_0 = arith.constant 0 : i32
    return %arg0, %c0_i32 : i32, i32
  }
}

</mosaic_0001>

<bundles_post_ra>
// kernel: tpu_custom_call.1
= control target key start
LH: loop header
LB: loop body
LE: loop exit
PB: predicated region body
PF: predicated region fallthrough
CT: control target
= control target key end

     0   :  { %s1010_s0 = inlined_call_operand.hbm [shape: f32[16,32], index: 0, kind: input, shape index: {}]   ;;  %s1011_s1 = inlined_call_operand.hbm [shape: f32[32,32], index: 1, kind: input, shape index: {}]   ;;  %s1012_s2 = inlined_call_operand.vmem [shape: f32[1,32], index: 2, kind: input, shape index: {}]   ;;  %s1013_s3 = inlined_call_operand.vmem [shape: f32[1,32], index: 3, kind: input, shape index: {}]   ;;  %s1014_s4 = inlined_call_operand.vmem [shape: f32[1,32], index: 4, kind: input, shape index: {}]   ;;  %s1015_s5 = inlined_call_operand.hbm [shape: f32[32,128], index: 5, kind: input, shape index: {}]   ;;  %s1016_s6 = inlined_call_operand.vmem [shape: f32[1,128], index: 6, kind: input, shape index: {}]   ;;  %s1017_s7 = inlined_call_operand.hbm [shape: f32[16,128], index: 7, kind: output, shape index: {}]  }
   0x1   :  { %1018 = sst [smem:[#allocation12_spill]] %s1011_s1 }
   0x2   :  { %1019 = sst [smem:[#allocation13_spill]] %s1015_s5 }
   0x3   :  { %12 = vsyncpa [#allocation3], 0 }
   0x4   :  { %14 = vsyncpa [#allocation3 + $0x1], 0 }
   0x5   :  { %15 = vsyncpa [#allocation6], 0 }
   0x6   :  { %16 = vsyncpa [#allocation4], 0 }
   0x7   :  { %18 = vsyncpa [#allocation4 + $0x1], 0  ;;  %s845_s24 = smov 0   ;;  %s847_s25 = smov 0  }
   0x8   :  { %s849_s26 = smov 0   ;;  %s851_s27 = smov 0  }
   0x9 LB: > { %s1020_s1 = sld [smem:[#allocation12_spill]]  ;;  %s869_s8 = sadd.s32 4294967295, %s798_s27   ;;  %s798_s27 = sphi %s851_s27, %s1032_s27   ;;  %s794_s26 = sphi %s849_s26, %s1031_s26   ;;  %s790_s25 = sphi %s847_s25, %s1030_s25   ;;  %s786_s24 = sphi %s845_s24, %s1029_s24  }
   0xa   : > { %p543_p0 = scmp.ge.s32.totalorder %s798_s27, 1  ;;  %p45_p1 = scmp.eq.s32.totalorder %s869_s8, 0 }
   0xb   : > { %p207_p2 = scmp.lt.s32.totalorder %s798_s27, 3  ;;  %s800_s10 = smov [#allocation5]  }
   0xc   : > { %s220_s11 = sshll.u32 %s800_s10, 4  ;;  %s1022_s5 = sld [smem:[#allocation13_spill]]  ;;  %s221_s11 = int_to_ptr.vmem [resolvable:$true] %s220_s11 }
   0xd   : > { %p874_p3 = pnand %p543_p0, %p207_p2  ;;  %s801_s15 = smov [#allocation7]  }
   0xe   : > { %s243_s16 = sshll.u32 %s801_s15, 4  ;;  %s802_s17 = smov 128   ;;  %s244_s16 = int_to_ptr.vmem [resolvable:$true] %s243_s16 }
   0xf   : > { %s218_s30 = sshll.u32 %s1020_s1, 4  ;;  %p572_p4 = pneg %p874_p3  ;;  %s219_s30 = int_to_ptr.hbm [resolvable:$true] %s218_s30 }
  0x10   : > { %s803_s18 = smov 8   ;;  %s542_s19 = sadd.s32 4294967294, %s798_s27  }
  0x11   : > { %p573_p6 = pnand %p572_p4, %p45_p1  ;;  %s888_s20 = sadd.s32 1, %s798_s27  }
  0x12   : > { %s241_s14 = sshll.u32 %s1022_s5, 4  ;;  %s28_s21 = ssub.s32 %s798_s27, %s888_s20  ;;  %s242_s14 = int_to_ptr.hbm [resolvable:$true] %s241_s14 }
  0x13   : > { %575 = dma.hbm_to_vmem [thread:$0]  (!%p573_p6), %s219_s30, 512, %s221_s11, [#allocation6], %s802_s17, %s802_s17, %s803_s18  }
  0x14   : > { %578 = dma.hbm_to_vmem [thread:$0]  (!%p573_p6), %s242_s14, 512, %s244_s16, [#allocation6], %s802_s17, %s802_s17, %s803_s18  }
  0x15   : > { %s31_s22 = sadd.s32 1, %s794_s26  ;;  %p29_p7 = scmp.eq.s32.totalorder %s28_s21, 0 }
  0x16   : > { %p38_p8 = scmp.ne.s32.totalorder %s794_s26, %s790_s25  ;;  %p39_p9 = scmp.eq.s32.totalorder %s798_s27, 0 }
  0x17   : > { %p44_p10 = scmp.ne.s32.totalorder %s790_s25, %s786_s24  ;;  %p194_p13 = scmp.eq.s32.totalorder %s869_s8, 1 }
  0x18   : > { %s899_s23 = scalar_select %p29_p7, %s794_s26, %s31_s22  }
  0x19   : > { %p901_p11 = por %p39_p9, %p38_p8  ;;  %p907_p12 = por %p45_p1, %p44_p10 }
  0x1a   : > { %p200_p0 = scmp.eq.s32.totalorder %s542_s19, 1  ;;  %p589_p2 = scmp.lt.s32.totalorder %s798_s27, 2 }
  0x1b   : > { %s260_s30 = sand.u32 1, %s794_s26   ;;  %p914_p4 = por %p194_p13, %p38_p8 }
  0x1c   : > { %p918_p6 = por %p200_p0, %p44_p10  ;;  %s547_s12 = sshll.u32 %s260_s30, 3 }
  0x1d   : > { %s548_s13 = sshll.u32 %s798_s27, 3  ;;  %s264_s17 = scalar_lea.vmem [#allocation2], %s547_s12 }
  0x1e   : > { %s268_s16 = scalar_lea.hbm %s1010_s0, %s548_s13  ;;  %s272_s18 = sshll.u32 %s264_s17, 4  ;;  %s273_s18 = int_to_ptr.vmem [resolvable:$true] %s272_s18 }
  0x1f   : > { %s270_s21 = sshll.u32 %s268_s16, 4  ;;  %p928_p7 = pnand %p589_p2, %p901_p11  ;;  %s271_s21 = int_to_ptr.hbm [resolvable:$true] %s270_s21 }
  0x20   : > { %s261_s22 = scalar_lea.sflag [#allocation3], %s260_s30  ;;  %s698_s1 = sshra.s32 %s271_s21, 4  ;;  %s699_s1 = int_to_ptr.hbm [resolvable:$true] %s698_s1 }
  0x21   : > { %s700_s5 = scalar_lea.hbm %s699_s1, 8  ;;  %p702_p9 = pneg %p928_p7 }
  0x22   : > { %p701_p8 = scmp.ne.s32.totalorder %s699_s1, %s700_s5  ;;  %s705_s14 = scalar_lea.hbm %s1010_s0, 16 }
  0x23   : > { %p706_p11 = scmp.lt.s32.totalorder %s699_s1, %s1010_s0  ;;  %p707_p0 = scmp.lt.s32.totalorder %s705_s14, %s700_s5 }
  0x24   : > { %p703_p10 = pnand %p702_p9, %p701_p8 }
  0x25   : > { %p708_p2 = por %p707_p0, %p706_p11 }
  0x26   : > { %p704_p13 = pneg %p703_p10 }
  0x28   : > { %p709_p5 = pnand %p708_p2, %p704_p13 }
  0x2a   : > { %712 = shalt.err (!%p709_p5)
}
  0x2b   : > { %582 = dma.hbm_to_vmem [thread:$0]  (!%p928_p7), %s271_s21, 128, %s273_s18, %s261_s22  }
  0x2c   : > { %281 = sbr.rel (%p874_p3) target bundleno = 478 (0x1de), region = 48  ;;  %s945_s30 = sand.u32 (!%p874_p3), 1, %s790_s25  }
  0x2d   : > { %s550_s16 = sshll.u32 (!%p874_p3), %s945_s30, 3  ;;  %s284_s17 = scalar_lea.sflag (!%p874_p3), [#allocation3], %s945_s30 }
  0x2e   : > { %s287_s1 = scalar_lea.vmem (!%p874_p3), [#allocation2], %s550_s16 }
  0x31   : > { %773 = dma.done.wait (%p907_p12), %s284_s17, 128  }
  0x32   : > { %775 = vsyncadd (%p907_p12), %s284_s17, 4294967168 }
  0x33   : > { %777 = dma.done.wait (%p45_p1), [#allocation6], 1024  }
  0x34   : > { %779 = vsyncadd (%p45_p1), [#allocation6], 4294966272  ;;  %v333_v0 = vld [vmem:[#allocation5 + $0x18] sm:$0xff]  ;;  %v332_v1 = vld [vmem:[#allocation5 + $0x10] sm:$0xff]  ;;  %vm338_vm0 = vcmask 261120   ;;  %v804_v12 = vmov 32.0  }
  0x35   : > { %354 = vmatpush.msra.mxu0 %v333_v0  ;;  %v331_v2 = vld [vmem:[#allocation5 + $0x8] sm:$0xff]  ;;  %v330_v3 = vld [vmem:[#allocation5] sm:$0xff]  ;;  %v329_v4 = vld [vmem:[%s287_s1] sm:$0xff]  ;;  %634 = vrcp.f32 %v804_v12  ;;  %s557_s22 = sshll.u32 %s869_s8, 3  ;;  %s328_s17 = scalar_lea.vmem [#allocation8], %s550_s16 }
  0x36   : > { %v630_v5 = vld [vmem:[%s1012_s2] ss:$0 sm:$0xff]  ;;  %v408_v19 = vld [vmem:[#allocation7 + $0x18] sm:$0xff]  ;;  %v406_v22 = vld [vmem:[#allocation7 + $0x8] sm:$0xff]  ;;  %s448_s14 = scalar_lea.hbm %s1017_s7, %s557_s22  ;;  %s450_s1 = sshll.u32 %s328_s17, 4  ;;  %s451_s1 = int_to_ptr.vmem [resolvable:$true] %s450_s1 }
  0x37   : > { %355 = vmatpush.msra.mxu0 %v332_v1  ;;  %v407_v20 = vld [vmem:[#allocation7 + $0x10] sm:$0xff]  ;;  %428 = vmatpush.msra.mxu1 %v408_v19  ;;  %v405_v23 = vld [vmem:[#allocation7] sm:$0xff]  ;;  %s452_s5 = sshll.u32 %s448_s14, 4  ;;  %s438_s9 = scalar_lea.sflag [#allocation4], %s945_s30  ;;  %s453_s5 = int_to_ptr.hbm [resolvable:$true] %s452_s5 }
  0x38   : > { %v631_v38 = vld [vmem:[%s1013_s3] ss:$0 sm:$0xff]  ;;  %s742_s8 = sshra.s32 %s453_s5, 4  ;;  %s748_s19 = scalar_lea.hbm %s1017_s7, 16  ;;  %s743_s8 = int_to_ptr.hbm [resolvable:$true] %s742_s8 }
  0x39   : > { %356 = vmatpush.msra.mxu0 %v331_v2  ;;  %429 = vmatpush.msra.mxu1 %v407_v20  ;;  %v632_v41 = vld [vmem:[%s1014_s4] ss:$0 sm:$0xff]  ;;  %s744_s29 = scalar_lea.hbm %s743_s8, 8  ;;  %p749_p12 = scmp.lt.s32.totalorder %s743_s8, %s1017_s7 }
  0x3a   : > { %v633_v44 = vld [vmem:[%s1016_s6] ss:$0 sm:$0xff]  ;;  %p745_p1 = scmp.ne.s32.totalorder %s743_s8, %s744_s29  ;;  %p750_p7 = scmp.lt.s32.totalorder %s748_s19, %s744_s29 }
  0x3b   : > { %357 = vmatpush.msra.mxu0 %v330_v3  ;;  %v635_v13 = vpop.eup %634  ;;  %430 = vmatpush.msra.mxu1 %v406_v22 }
  0x3c   : > { %554 = vmatmul.msk.f32.vlgmr.msra.gmra.mxu0 %vm338_vm0, %v329_v4  ;;  %v367_v14 = vmul.f32 32.0, %v635_v13  ;;  %vm371_vm1 = vweird.f32 %v635_v13  ;;  %p746_p3 = pnand %p745_p1, %p914_p4  ;;  %p751_p8 = por %p750_p7, %p749_p12 }
  0x3d   : > { %431 = vmatpush.msra.mxu1 %v405_v23 }
  0x3e   : > { %v368_v15 = vsub.f32 1.0, %v367_v14  ;;  %p747_p5 = pneg %p746_p3 }
  0x40   : > { %v369_v16 = vmul.f32 %v635_v13, %v368_v15  ;;  %p752_p9 = pnand %p751_p8, %p747_p5 }
  0x42   : > { %v370_v17 = vadd.f32 %v635_v13, %v369_v16 }
  0x44   : > { %v372_v21 = vsel %vm371_vm1, %v635_v13, %v370_v17 }
  0xb9   : > { %v359_v6 = vpop.f32.mrf.mxu0 }
  0xba   : > { %v360_v7 = vadd.f32 %v630_v5, %v359_v6 }
  0xbc   : > { %v362_v8 = vmax.f32 %v360_v7, 0.0 }
  0xbe   : > { %v363_v9 = vsel %vm338_vm0, %v362_v8, 0.0  ;;  %v374_v10 = vmul.f32 %v362_v8, %v362_v8 }
  0xbf   : > { %364 = vadd.xlane.f32.xlu0 %v363_v9 }
  0xc0   : > { %v375_v11 = vsel %vm338_vm0, %v374_v10, 0.0 }
  0xc7   : > { %376 = vadd.xlane.f32.xlu0 %v375_v11 }
 0x132   : > { %v365_v18 = vpop.xlane.xlu0 %364 }
 0x133   : > { %v373_v24 = vmul.f32 %v372_v21, %v365_v18 }
 0x135   : > { %v379_v26 = vmul.f32 %v373_v24, %v373_v24  ;;  %v382_v37 = vsub.f32 %v362_v8, %v373_v24 }
 0x13a   : > { %v377_v25 = vpop.xlane.xlu0 %376 }
 0x13b   : > { %v378_v27 = vmul.f32 %v377_v25, %v372_v21 }
 0x13d   : > { %v380_v28 = vsub.f32 %v378_v27, %v379_v26 }
 0x13f   : > { %v381_v29 = vmax.f32 %v380_v28, 0.0 }
 0x141   : > { %v383_v30 = vadd.f32 1e-12, %v381_v29 }
 0x143   : > { %636 = vrsqrt.f32 %v383_v30  ;;  %vm390_vm3 = vweird.f32 %v383_v30 }
 0x149   : > { %v637_v31 = vpop.eup %636 }
 0x14a   : > { %v385_v32 = vmul.f32 %v637_v31, %v383_v30  ;;  %vm391_vm2 = vweird.f32 %v637_v31 }
 0x14b   : > { %vm392_vm4 = vmor %vm390_vm3, %vm391_vm2 }
 0x14c   : > { %v386_v33 = vmul.f32 %v637_v31, %v385_v32 }
 0x14e   : > { %v387_v34 = vmul.f32 0.5, %v386_v33 }
 0x150   : > { %v388_v35 = vsub.f32 1.5, %v387_v34 }
 0x152   : > { %v389_v36 = vmul.f32 %v637_v31, %v388_v35 }
 0x154   : > { %v393_v39 = vsel %vm392_vm4, %v637_v31, %v389_v36 }
 0x155   : > { %v394_v40 = vmul.f32 %v393_v39, %v382_v37 }
 0x157   : > { %v399_v42 = vmul.f32 %v631_v38, %v394_v40 }
 0x159   : > { %v404_v43 = vadd.f32 %v632_v41, %v399_v42 }
 0x15b   : > { %555 = vmatmul.msk.f32.vlgmr.msra.gmra.mxu1 %vm338_vm0, %v404_v43 }
 0x1d8   : > { %v433_v45 = vpop.f32.mrf.mxu1 }
 0x1d9   : > { %v434_v46 = vadd.f32 %v633_v44, %v433_v45 }
 0x1db   : > { %436 = vst [vmem:[%s328_s17] sm:$0xff] %v434_v46 }
 0x1dc   : > { %755 = shalt.err (!%p752_p9)
}
 0x1dd   : > { %570 = dma.vmem_to_hbm [thread:$0]  (%p914_p4), %s451_s1, 128, %s453_s5, %s438_s9  }
 0x1de PF: > { %s464_s30 = sand.u32 1, %s786_s24   ;;  %p1028_p10 = scmp.ge.s32.totalorder %s798_s27, 2 }
 0x1df   : > { %s465_s12 = scalar_lea.sflag [#allocation4], %s464_s30 }
 0x1e0   : > { %p584_p13 = pnand %p1028_p10, %p918_p6 }
 0x1e2   : > { %p585_p11 = pneg %p584_p13 }
 0x1e4   : > { %781 = dma.done.wait (%p585_p11), %s465_s12, 128  }
 0x1e5   : > { %783 = vsyncadd (%p585_p11), %s465_s12, 4294967168  ;;  %p21_p0 = scmp.ge.s32.totalorder %s888_s20, 4   ;;  %s1029_s24 = smov %s790_s25 }
 0x1e6   : > { %s1030_s25 = smov %s794_s26  ;;  %s1031_s26 = smov %s899_s23 }
 0x1e7   : > { %s1032_s27 = smov %s888_s20  ;;  %23 = sbr.rel (!%p21_p0) target bundleno = 9 (0x9), region = 101 }
 0x1ec   :  { %471 = vsyncpa [#allocation3], 1 }
 0x1ed   :  { %473 = vsyncpa [#allocation3 + $0x1], 1 }
 0x1ee   :  { %474 = vsyncpa [#allocation6], 1 }
 0x1ef   :  { %475 = vsyncpa [#allocation4], 1 }
 0x1f0   :  { %477 = vsyncpa [#allocation4 + $0x1], 1 }

</bundles_post_ra>
